<compile_context>
chip_gen: v7x
topology: tpu7x:2x2x1
jax: 0.10.0
libtpu: 0.0.40
codegen_flags: <defaults>
</compile_context>

<pallas_src>
import functools

import jax
import jax.numpy as jnp
from jax.experimental import pallas as pl
from jax.experimental.pallas import tpu as pltpu


_RESIDENT_VMEM_BUDGET = 24 * 1024 * 1024   # conservative across v5e / v6e / v7x
_TILED_VMEM_BUDGET = 28 * 1024 * 1024
_VMEM_LIMIT_BYTES = 40 * 1024 * 1024       # below v7x's 64 MiB physical VMEM


def _round_up(x, m):
    return (x + m - 1) // m * m


def _row_tile(m_rows, cap):
    """Row tile: full extent if it fits under `cap`, else a multiple-of-8 tile."""
    t = min(cap, m_rows)
    if t < m_rows:
        t = max(8, (t // 8) * 8)
    return t


# ---------------------------------------------------------------------------
# Fast path: weight resident in VMEM, 1-D grid over row tiles.
# ---------------------------------------------------------------------------
def _sub_fc_resident_kernel(m_ref, i_ref, w_ref, b_ref, o_ref, *, cast_bf16):
    x = m_ref[...] - i_ref[...]               # VPU elementwise subtract
    if cast_bf16:
        x = x.astype(jnp.bfloat16)            # MXU-native operand (W^T already bf16)
    y = jnp.dot(x, w_ref[...], preferred_element_type=jnp.float32)
    o_ref[...] = (y + b_ref[...].astype(jnp.float32)).astype(o_ref.dtype)


# ---------------------------------------------------------------------------
# Large-E fallback: (rows, out-cols, K) grid with a cached subtracted LHS panel.
# ---------------------------------------------------------------------------
def _sub_fc_tiled_kernel(m_ref, i_ref, w_ref, b_ref, o_ref, x_panel, acc_ref,
                         *, tile_k, num_k):
    j = pl.program_id(1)
    k = pl.program_id(2)

    # Subtract once per row tile; the panel is re-used for every (j, k) step.
    @pl.when((j == 0) & (k == 0))
    def _build_panel():
        for kk in range(num_k):               # static unroll, lane-aligned slices
            sl = slice(kk * tile_k, (kk + 1) * tile_k)
            x_panel[kk] = (m_ref[:, sl] - i_ref[:, sl]).astype(x_panel.dtype)

    @pl.when(k == 0)
    def _init():
        acc_ref[...] = jnp.zeros_like(acc_ref)

    acc_ref[...] += jnp.dot(x_panel[k], w_ref[...],
                            preferred_element_type=jnp.float32)

    @pl.when(k == pl.num_programs(2) - 1)
    def _finalize():
        o_ref[...] = (acc_ref[...] + b_ref[...].astype(jnp.float32)).astype(o_ref.dtype)


def sub_forward(mixtures, itf_speaker, weight, bias, *,
                tile_m=512, tile_n=256, tile_k=256,
                mxu_bf16=False, force_tiled=False):
    """mixtures, itf_speaker: [B, L, E]; weight: [E, E] (PyTorch [out, in]); bias: [E]."""
    B, L, E = mixtures.shape
    M = B * L
    x_dtype = mixtures.dtype
    x_bytes = jnp.dtype(x_dtype).itemsize

    m2 = mixtures.reshape(M, E)               # free reshapes (no copies)
    i2 = itf_speaker.reshape(M, E)
    w_t = weight.T                            # one-time tiny E x E transpose -> [in, out]
    if mxu_bf16 and w_t.dtype == jnp.float32:
        w_t = w_t.astype(jnp.bfloat16)        # halves W HBM bytes + MXU-native
    w_bytes = jnp.dtype(w_t.dtype).itemsize
    b2 = bias.reshape(1, E)

    # ----------------- fast path: W^T resident in VMEM ---------------------
    def resident_bytes(tm_):
        return (2 * E * E * w_bytes               # W^T (double-buffered allocation)
                + 2 * 2 * tm_ * E * x_bytes       # mixtures + itf row tiles, x2 buffers
                + 2 * tm_ * E * x_bytes           # output tiles, x2 buffers
                + 2 * 128 * E * 4)                # bias + slack

    cap = tile_m
    tm = _row_tile(M, cap)
    while resident_bytes(tm) > _RESIDENT_VMEM_BUDGET and cap > 8:
        cap = max(8, cap // 2)
        new_tm = _row_tile(M, cap)
        if new_tm == tm:
            break
        tm = new_tm

    if not force_tiled and resident_bytes(tm) <= _RESIDENT_VMEM_BUDGET:
        kernel = functools.partial(_sub_fc_resident_kernel, cast_bf16=mxu_bf16)
        out = pl.pallas_call(
            kernel,
            out_shape=jax.ShapeDtypeStruct((M, E), x_dtype),
            grid_spec=pltpu.PrefetchScalarGridSpec(
                num_scalar_prefetch=0,
                grid=(pl.cdiv(M, tm),),
                in_specs=[
                    pl.BlockSpec((tm, E), lambda i: (i, 0)),   # mixtures rows
                    pl.BlockSpec((tm, E), lambda i: (i, 0)),   # itf rows
                    pl.BlockSpec((E, E), lambda i: (0, 0)),    # W^T, fetched once
                    pl.BlockSpec((1, E), lambda i: (0, 0)),    # bias, fetched once
                ],
                out_specs=pl.BlockSpec((tm, E), lambda i: (i, 0)),
            ),
            compiler_params=pltpu.CompilerParams(
                dimension_semantics=("parallel",),             # v7x megacore row split
                vmem_limit_bytes=_VMEM_LIMIT_BYTES,
            ),
        )(m2, i2, w_t, b2)
        return out.reshape(B, L, E)

    # --------------- large-E fallback: K/N-tiled with cached LHS panel -----
    tn = tile_n if E >= tile_n else E         # 256-granular N tile (full dim if tiny)
    tk = tile_k                               # 256-granular K tile
    E_k = _round_up(E, tk)
    num_k = E_k // tk
    panel_dtype = jnp.bfloat16 if mxu_bf16 else x_dtype
    panel_bytes = jnp.dtype(panel_dtype).itemsize

    def tiled_bytes(tm_):
        return (2 * 2 * tm_ * E_k * x_bytes       # mixtures + itf row panels, x2 buffers
                + tm_ * E_k * panel_bytes         # cached subtracted panel
                + tm_ * tn * 4                    # f32 accumulator
                + 2 * tm_ * tn * x_bytes          # output tiles, x2 buffers
                + 2 * 2 * tk * tn * w_bytes       # W^T tiles, x2 buffers
                + 2 * 128 * tn * 4)               # bias + slack

    cap = tile_m
    tm = _row_tile(M, cap)
    while tiled_bytes(tm) > _TILED_VMEM_BUDGET and cap > 8:
        cap = max(8, cap // 2)
        new_tm = _row_tile(M, cap)
        if new_tm == tm:
            break
        tm = new_tm

    # Only the contraction axis needs exact zero padding (correct K accumulation);
    # rows and output columns use ragged edge blocks instead of pad copies.
    pad_k = E_k - E
    m2p = jnp.pad(m2, ((0, 0), (0, pad_k))) if pad_k else m2
    i2p = jnp.pad(i2, ((0, 0), (0, pad_k))) if pad_k else i2
    w_tp = jnp.pad(w_t, ((0, pad_k), (0, 0))) if pad_k else w_t

    kernel = functools.partial(_sub_fc_tiled_kernel, tile_k=tk, num_k=num_k)
    out = pl.pallas_call(
        kernel,
        out_shape=jax.ShapeDtypeStruct((M, E), x_dtype),
        grid_spec=pltpu.PrefetchScalarGridSpec(
            num_scalar_prefetch=0,
            grid=(pl.cdiv(M, tm), pl.cdiv(E, tn), num_k),
            in_specs=[
                pl.BlockSpec((tm, E_k), lambda i, j, k: (i, 0)),  # mixtures row panel
                pl.BlockSpec((tm, E_k), lambda i, j, k: (i, 0)),  # itf row panel
                pl.BlockSpec((tk, tn), lambda i, j, k: (k, j)),   # W^T tile
                pl.BlockSpec((1, tn), lambda i, j, k: (0, j)),    # bias tile
            ],
            out_specs=pl.BlockSpec((tm, tn), lambda i, j, k: (i, j)),
            scratch_shapes=[
                pltpu.VMEM((num_k, tm, tk), panel_dtype),         # cached (mix - itf)
                pltpu.VMEM((tm, tn), jnp.float32),                # accumulator
            ],
        ),
        compiler_params=pltpu.CompilerParams(
            # j/k must stay "arbitrary": the cached panel and the accumulator rely on
            # sequential (j, k) execution within each row tile; the row axis stays
            # "parallel" so v7x's two TensorCores split row tiles.
            dimension_semantics=("parallel", "arbitrary", "arbitrary"),
            vmem_limit_bytes=_VMEM_LIMIT_BYTES,
        ),
    )(m2p, i2p, w_tp, b2)
    return out.reshape(B, L, E)


if __name__ == "__main__":
    B, L, E = 2, 8, 32   # [batch, length, embed_dim]

    key = jax.random.PRNGKey(0)
    k_mix, k_itf, k_w, k_b = jax.random.split(key, 4)

    mixtures = jax.random.normal(k_mix, (B, L, E), dtype=jnp.float32)
    itf_speaker = jax.random.normal(k_itf, (B, L, E), dtype=jnp.float32)

    # Deterministic Linear(E, E) params (PyTorch-style uniform init, bound = 1/sqrt(E))
    bound = 1.0 / (E ** 0.5)
    weight = jax.random.uniform(k_w, (E, E), dtype=jnp.float32,
                                minval=-bound, maxval=bound)
    bias = jax.random.uniform(k_b, (E,), dtype=jnp.float32,
                              minval=-bound, maxval=bound)

    ref = (mixtures - itf_speaker) @ weight.T + bias

    # Fast (weight-resident) path, exact f32.
    out = sub_forward(mixtures, itf_speaker, weight, bias)
    jax.block_until_ready(out)
    assert out.shape == (B, L, E)
    assert jnp.allclose(out, ref, atol=1e-5, rtol=1e-5), "resident path mismatch"

    # Large-E tiled fallback (forced at small shape for coverage), exact f32.
    out_tiled = sub_forward(mixtures, itf_speaker, weight, bias, force_tiled=True)
    jax.block_until_ready(out_tiled)
    assert jnp.allclose(out_tiled, ref, atol=1e-5, rtol=1e-5), "tiled path mismatch"

    # Optional bf16-MXU path (looser tolerance).
    out_bf16 = sub_forward(mixtures, itf_speaker, weight, bias, mxu_bf16=True)
    jax.block_until_ready(out_bf16)
    assert jnp.allclose(out_bf16, ref, atol=5e-2, rtol=5e-2), "bf16 path mismatch"

    print("KERNEL_OK")
</pallas_src>

<mosaic_0001>
module attributes {stable_mosaic.version = 11 : i64} {
  func.func @_sub_fc_resident_kernel(%arg0: i32, %arg1: memref<16x32xf32, #tpu.memory_space<vmem>>, %arg2: memref<16x32xf32, #tpu.memory_space<vmem>>, %arg3: memref<32x32xf32, #tpu.memory_space<vmem>>, %arg4: memref<1x32xf32, #tpu.memory_space<vmem>>, %arg5: memref<16x32xf32, #tpu.memory_space<vmem>>) attributes {dimension_semantics = [#tpu.dimension_semantics<parallel>], iteration_bounds = array<i64: 1>, scalar_prefetch = 0 : i64, scratch_operands = 0 : i64, tpu.core_type = #tpu.core_type<tc>, window_params = [{transform_indices = @transform_0, window_bounds = array<i64: 16, 32>}, {transform_indices = @transform_1, window_bounds = array<i64: 16, 32>}, {pipeline_mode = #tpu.pipeline_mode<synchronous>, transform_indices = @transform_2, window_bounds = array<i64: 32, 32>}, {pipeline_mode = #tpu.pipeline_mode<synchronous>, transform_indices = @transform_3, window_bounds = array<i64: 1, 32>}, {transform_indices = @transform_4, window_bounds = array<i64: 16, 32>}]} {
    %c0 = arith.constant 0 : index
    %c0_0 = arith.constant 0 : index
    %0 = vector.load %arg1[%c0, %c0_0] : memref<16x32xf32, #tpu.memory_space<vmem>>, vector<16x32xf32>
    %c0_1 = arith.constant 0 : index
    %c0_2 = arith.constant 0 : index
    %1 = vector.load %arg2[%c0_1, %c0_2] : memref<16x32xf32, #tpu.memory_space<vmem>>, vector<16x32xf32>
    %2 = arith.subf %0, %1 : vector<16x32xf32>
    %c0_3 = arith.constant 0 : index
    %c0_4 = arith.constant 0 : index
    %3 = vector.load %arg3[%c0_3, %c0_4] : memref<32x32xf32, #tpu.memory_space<vmem>>, vector<32x32xf32>
    %cst = arith.constant dense<0.000000e+00> : vector<16x32xf32>
    %4 = tpu.matmul %2, %3, %cst {dimension_numbers = #tpu.dot_dimension_numbers<[1], [0], [0], [1], [0, 0, 1, 1], [], []>} : vector<16x32xf32>, vector<32x32xf32>, vector<16x32xf32> -> vector<16x32xf32>
    %c0_5 = arith.constant 0 : index
    %c0_6 = arith.constant 0 : index
    %5 = vector.load %arg4[%c0_5, %c0_6] : memref<1x32xf32, #tpu.memory_space<vmem>>, vector<1x32xf32>
    %6 = vector.broadcast %5 : vector<1x32xf32> to vector<16x32xf32>
    %7 = arith.addf %4, %6 : vector<16x32xf32>
    %c0_7 = arith.constant 0 : index
    %c0_8 = arith.constant 0 : index
    %8 = vector.load %arg5[%c0_7, %c0_8] : memref<16x32xf32, #tpu.memory_space<vmem>>, vector<16x32xf32>
    tpu.vector_store %arg5[%c0_7, %c0_8], %7 {strides = array<i32>} : memref<16x32xf32, #tpu.memory_space<vmem>>, vector<16x32xf32>,
    return
  }
  func.func @transform_0(%arg0: i32) -> (i32, i32) {
    %c0_i32 = arith.constant 0 : i32
    %c0_i32_0 = arith.constant 0 : i32
    return %arg0, %c0_i32 : i32, i32
  }
  func.func @transform_1(%arg0: i32) -> (i32, i32) {
    %c0_i32 = arith.constant 0 : i32
    %c0_i32_0 = arith.constant 0 : i32
    return %arg0, %c0_i32 : i32, i32
  }
  func.func @transform_2(%arg0: i32) -> (i32, i32) {
    %c0_i32 = arith.constant 0 : i32
    %c0_i32_0 = arith.constant 0 : i32
    %c0_i32_1 = arith.constant 0 : i32
    return %c0_i32, %c0_i32_0 : i32, i32
  }
  func.func @transform_3(%arg0: i32) -> (i32, i32) {
    %c0_i32 = arith.constant 0 : i32
    %c0_i32_0 = arith.constant 0 : i32
    %c0_i32_1 = arith.constant 0 : i32
    return %c0_i32, %c0_i32_0 : i32, i32
  }
  func.func @transform_4(%arg0: i32) -> (i32, i32) {
    %c0_i32 = arith.constant 0 : i32
    %c0_i32_0 = arith.constant 0 : i32
    return %arg0, %c0_i32 : i32, i32
  }
}

</mosaic_0001>

<bundles_post_ra>
// kernel: tpu_custom_call.1
= control target key start
LH: loop header
LB: loop body
LE: loop exit
PB: predicated region body
PF: predicated region fallthrough
CT: control target
= control target key end

     0   :  { %9 = vsyncpa [#allocation3], 0  ;;  %s411_s0 = inlined_call_operand.hbm [shape: f32[16,32], index: 0, kind: input, shape index: {}]   ;;  %s412_s1 = inlined_call_operand.hbm [shape: f32[16,32], index: 1, kind: input, shape index: {}]   ;;  %s413_s2 = inlined_call_operand.hbm [shape: f32[32,32], index: 2, kind: input, shape index: {}]   ;;  %s414_s3 = inlined_call_operand.vmem [shape: f32[1,32], index: 3, kind: input, shape index: {}]   ;;  %s415_s4 = inlined_call_operand.hbm [shape: f32[16,32], index: 4, kind: output, shape index: {}]  }
   0x1   :  { %10 = vsyncpa [#allocation6], 0 }
   0x2   :  { %11 = vsyncpa [#allocation4], 0  ;;  %s306_s15 = smov [#allocation5]   ;;  %s307_s17 = smov [#allocation2]  }
   0x3   :  { %s29_s16 = sshll.u32 %s306_s15, 4  ;;  %s17_s18 = sshll.u32 %s307_s17, 4  ;;  %s30_s16 = int_to_ptr.vmem [resolvable:$true] %s29_s16  ;;  %s337_s18 = int_to_ptr.vmem [resolvable:$true] %s17_s18 }
   0x4   :  { %s212_s21 = scalar_lea.hbm %s412_s1, 256 }
   0x5   :  { %p213_p0 = scmp.ne.s32.totalorder %s412_s1, %s212_s21  ;;  %p216_p1 = scmp.lt.u32.totalorder %s212_s21, %s412_s1 }
   0x7   :  { %p218_p2 = pnand %p216_p1, %p213_p0 }
   0x9   :  { %221 = shalt.err (!%p218_p2)
}
   0xa   :  { %s222_s26 = scalar_lea.vmem %s30_s16, 256  ;;  %p227_p4 = scmp.lt.s32.totalorder %s30_s16, %s30_s16 }
   0xb   :  { %p223_p3 = scmp.ne.s32.totalorder %s30_s16, %s222_s26  ;;  %p228_p5 = scmp.lt.s32.totalorder %s222_s26, %s222_s26 }
   0xd   :  { %p229_p6 = por %p228_p5, %p227_p4 }
   0xf   :  { %p230_p7 = pnand %p229_p6, %p223_p3 }
  0x11   :  { %233 = shalt.err (!%p230_p7)
}
  0x12   :  { %s308_s27 = smov 128   ;;  %s309_s28 = smov 8  }
  0x13   :  { %35 = dma.hbm_to_vmem [thread:$0]  %s412_s1, 256, %s30_s16, [#allocation6], %s308_s27, %s308_s27, %s309_s28  }
  0x14   :  { %s234_s7 = scalar_lea.hbm %s411_s0, 256 }
  0x15   :  { %p235_p8 = scmp.ne.s32.totalorder %s411_s0, %s234_s7  ;;  %p238_p9 = scmp.lt.u32.totalorder %s234_s7, %s411_s0 }
  0x17   :  { %p240_p10 = pnand %p238_p9, %p235_p8 }
  0x19   :  { %243 = shalt.err (!%p240_p10)
}
  0x1a   :  { %s244_s12 = scalar_lea.vmem %s337_s18, 256  ;;  %p249_p12 = scmp.lt.s32.totalorder %s337_s18, %s337_s18 }
  0x1b   :  { %p245_p11 = scmp.ne.s32.totalorder %s337_s18, %s244_s12  ;;  %p250_p13 = scmp.lt.s32.totalorder %s244_s12, %s244_s12 }
  0x1d   :  { %p251_p0 = por %p250_p13, %p249_p12 }
  0x1f   :  { %p252_p1 = pnand %p251_p0, %p245_p11 }
  0x21   :  { %255 = shalt.err (!%p252_p1)
}
  0x22   :  { %23 = dma.hbm_to_vmem [thread:$0]  %s411_s0, 256, %s337_s18, [#allocation3], %s308_s27, %s308_s27, %s309_s28  }
  0x23   :  { %s310_s14 = smov [#allocation7]   ;;  %s256_s19 = scalar_lea.hbm %s413_s2, 512 }
  0x24   :  { %s41_s15 = sshll.u32 %s310_s14, 4  ;;  %p257_p2 = scmp.ne.s32.totalorder %s413_s2, %s256_s19  ;;  %s42_s15 = int_to_ptr.vmem [resolvable:$true] %s41_s15 }
  0x25   :  { %p260_p3 = scmp.lt.u32.totalorder %s256_s19, %s413_s2 }
  0x27   :  { %p262_p4 = pnand %p260_p3, %p257_p2 }
  0x29   :  { %265 = shalt.err (!%p262_p4)
}
  0x2a   :  { %s266_s24 = scalar_lea.vmem %s42_s15, 512  ;;  %p271_p6 = scmp.lt.s32.totalorder %s42_s15, %s42_s15 }
  0x2b   :  { %p267_p5 = scmp.ne.s32.totalorder %s42_s15, %s266_s24  ;;  %p272_p7 = scmp.lt.s32.totalorder %s266_s24, %s266_s24 }
  0x2d   :  { %p273_p8 = por %p272_p7, %p271_p6 }
  0x2f   :  { %p274_p9 = pnand %p273_p8, %p267_p5 }
  0x31   :  { %277 = shalt.err (!%p274_p9)
}
  0x32   :  { %47 = dma.hbm_to_vmem [thread:$0]  %s413_s2, 512, %s42_s15, [#allocation6], %s308_s27, %s308_s27, %s309_s28  }
  0x33   :  { %300 = dma.done.wait [#allocation3], 256  }
  0x34   :  { %301 = vsyncadd [#allocation3], 4294967040 }
  0x35   :  { %302 = dma.done.wait [#allocation6], 768  }
  0x36   :  { %303 = vsyncadd [#allocation6], 4294966528  ;;  %v65_v0 = vld [vmem:[#allocation7] sm:$0xff]  ;;  %v66_v1 = vld [vmem:[#allocation7 + $0x8] sm:$0xff]  ;;  %vm76_vm0 = vcmask 261120   ;;  %s311_s26 = smov [#allocation8]  }
  0x37   :  { %v67_v2 = vld [vmem:[#allocation7 + $0x10] sm:$0xff]  ;;  %v198_v3 = vpack.c.bf16 %v66_v1, %v65_v0  ;;  %v68_v4 = vld [vmem:[#allocation7 + $0x18] sm:$0xff]  ;;  %v59_v5 = vld [vmem:[#allocation2] sm:$0xff]  ;;  %s165_s29 = sshll.u32 %s311_s26, 4  ;;  %s166_s29 = int_to_ptr.vmem [resolvable:$true] %s165_s29 }
  0x38   :  { %v61_v6 = vld [vmem:[#allocation5] sm:$0xff]  ;;  %v202_v7 = vpack.c.bf16 %v68_v4, %v67_v2  ;;  %v60_v9 = vld [vmem:[#allocation2 + $0x8] sm:$0xff]  ;;  %v62_v10 = vld [vmem:[#allocation5 + $0x8] sm:$0xff]  ;;  %s278_s30 = scalar_lea.vmem %s166_s29, 256  ;;  %p283_p11 = scmp.lt.s32.totalorder %s166_s29, %s166_s29 }
  0x39   :  { %v63_v8 = vsub.f32 %v59_v5, %v61_v6  ;;  %199 = vmatprep.subr.bf16.mxu0 %v198_v3  ;;  %v64_v11 = vsub.f32 %v60_v9, %v62_v10  ;;  %v178_v12 = vld [vmem:[%s414_s3] ss:$0 sm:$0xff]  ;;  %p279_p10 = scmp.ne.s32.totalorder %s166_s29, %s278_s30  ;;  %p284_p12 = scmp.lt.s32.totalorder %s278_s30, %s278_s30 }
  0x3a   :  { %201 = vmatpush3.bf16.msra.mxu0 %v198_v3 }
  0x3b   :  { %195 = vmatprep.mubr.msk.f32.mxu0 %vm76_vm0, %v63_v8  ;;  %203 = vmatprep.subr.bf16.mxu0 %v202_v7  ;;  %p285_p13 = por %p284_p12, %p283_p11 }
  0x3d   :  { %p286_p0 = pnand %p285_p13, %p279_p10 }
  0x3e   :  { %205 = vmatpush3.bf16.msra.mxu0 %v202_v7 }
  0x41   :  { %196 = vmatmul.mubr.msk.f32.vlgmr.msra.gmra.mrb[0].mxu0 %vm76_vm0, %v64_v11 }
 0x114   :  { %v197_v13 = vpop.f32.mrb[0].mxu0 }
 0x115   :  { %v155_v14 = vadd.f32 %v197_v13, %v178_v12  ;;  %v149_v15 = vpop.f32.mrb[1].mxu0 }
 0x116   :  { %v150_v16 = vadd.f32 %v178_v12, %v149_v15 }
 0x117   :  { %159 = vst.msk [vmem:[#allocation8 + $0x8] sm:$0xff] %vm76_vm0, %v155_v14 }
 0x118   :  { %158 = vst.msk [vmem:[#allocation8] sm:$0xff] %vm76_vm0, %v150_v16 }
 0x119   :  { %289 = shalt.err (!%p286_p0)
}
 0x11a   :  { %s290_s6 = scalar_lea.hbm %s415_s4, 256 }
 0x11b   :  { %p291_p1 = scmp.ne.s32.totalorder %s415_s4, %s290_s6  ;;  %p294_p2 = scmp.lt.u32.totalorder %s290_s6, %s415_s4 }
 0x11d   :  { %p296_p3 = pnand %p294_p2, %p291_p1 }
 0x11f   :  { %299 = shalt.err (!%p296_p3)
}
 0x120   :  { %171 = dma.vmem_to_hbm [thread:$0]  %s166_s29, 256, %s415_s4, [#allocation4], %s308_s27, %s308_s27, %s309_s28  }
 0x121   :  { %304 = dma.done.wait [#allocation4], 256  }
 0x122   :  { %305 = vsyncadd [#allocation4], 4294967040 }
 0x123   :  { %175 = vsyncpa [#allocation3], 1 }
 0x124   :  { %176 = vsyncpa [#allocation6], 1 }
 0x125   :  { %177 = vsyncpa [#allocation4], 1 }

</bundles_post_ra>
